<compile_context>
chip_gen: v5e
topology: v5e:2x2
jax: 0.10.0
libtpu: 0.0.40
codegen_flags: <defaults>
</compile_context>

<pallas_src>
import functools

import jax
import jax.numpy as jnp
from jax.experimental import pallas as pl
from jax.experimental.pallas import tpu as pltpu


# ---------------------------------------------------------------------------
# Fused kernel: attention mask + masked mean over seq + tanh pooler + classifier
# ---------------------------------------------------------------------------
def _fused_pooler_classifier_kernel(vl_ref, emb_ref, wp_ref, bp_ref, wc_ref,
                                    bc_ref, logits_ref, acc_ref, *, seq_len):
    k = pl.program_id(1)                       # seq (reduction) axis, last
    nk = pl.num_programs(1)
    TB, TS, H = emb_ref.shape

    @pl.when(k == 0)
    def _init():
        acc_ref[...] = jnp.zeros_like(acc_ref)

    emb = emb_ref[...]                         # (TB, TS, H) bf16

    # Attention mask for this (batch tile, seq tile): mask[b, s] = s < valid_length[b]
    col = jax.lax.broadcasted_iota(jnp.int32, (TB, 1, TS), 2) + k * TS
    vl = vl_ref[...]                           # (TB, 1) int32
    mask = (col < vl.reshape(TB, 1, 1)).astype(emb.dtype)   # (TB, 1, TS)

    # Masked sum over the seq tile as a batched MXU contraction:
    #   (TB, 1, TS) @ (TB, TS, H) -> (TB, 1, H), accumulated in f32.
    part = jnp.einsum('bqs,bsh->bqh', mask, emb,
                      preferred_element_type=jnp.float32)
    acc_ref[...] += part[:, 0, :]

    @pl.when(k == nk - 1)
    def _finalize():
        # masked mean: denom == sum of the mask == clamp(valid_length, 1, S)
        denom = jnp.clip(vl.astype(jnp.float32), 1.0, float(seq_len))   # (TB, 1)
        mean = acc_ref[...] * pl.reciprocal(denom, approx=True)         # (TB, H) f32

        # BERT-style pooler: dense + tanh (f32 throughout; v5e has no bf16 VPU/EUP)
        pooled = jnp.tanh(
            jnp.dot(mean, wp_ref[...], preferred_element_type=jnp.float32)
            + bp_ref[...])                                              # (TB, H)

        # classifier: x @ Wc^T + bc (Wc pre-transposed and lane-padded to (H, 128))
        logits_ref[...] = (
            jnp.dot(pooled, wc_ref[...], preferred_element_type=jnp.float32)
            + bc_ref[...]).astype(logits_ref.dtype)                     # (TB, C_pad)


# ---------------------------------------------------------------------------
# Wrapper
# ---------------------------------------------------------------------------
def bert_classifier_forward(token_ids, valid_length, segment_ids, params,
                            *, tile_b=8, tile_s=128):
    """Forward pass equivalent of BERTClassifier.forward (eval mode)."""
    B, S = token_ids.shape
    H = params["word_emb"].shape[1]
    C = params["wc"].shape[0]

    # Embedding lookup: data-dependent gather, stays in plain JAX glue.
    emb = (jnp.take(params["word_emb"], token_ids, axis=0)
           + jnp.take(params["seg_emb"], segment_ids, axis=0))
    emb = emb.astype(jnp.bfloat16)             # halve HBM bytes on the dominant stream

    # Tile sizes (fall back to full extent for tiny shapes).
    TB = tile_b if B % tile_b == 0 else B
    TS = tile_s if S % tile_s == 0 else S
    grid = (B // TB, S // TS)

    # Lane-dense classifier output: pad C up to a multiple of 128.
    C_pad = ((C + 127) // 128) * 128
    wc_t = jnp.zeros((H, C_pad), jnp.float32).at[:, :C].set(params["wc"].T)
    bc = jnp.zeros((1, C_pad), jnp.float32).at[:, :C].set(params["bc"].reshape(1, C))
    bp = params["bp"].reshape(1, H).astype(jnp.float32)
    wp = params["wp"].astype(jnp.float32)
    vl2d = valid_length.reshape(B, 1).astype(jnp.int32)

    kernel = functools.partial(_fused_pooler_classifier_kernel, seq_len=S)

    logits_pad = pl.pallas_call(
        kernel,
        out_shape=jax.ShapeDtypeStruct((B, C_pad), jnp.float32),
        grid_spec=pltpu.PrefetchScalarGridSpec(
            num_scalar_prefetch=0,
            grid=grid,
            in_specs=[
                pl.BlockSpec((TB, 1), lambda i, k: (i, 0)),         # valid_length
                pl.BlockSpec((TB, TS, H), lambda i, k: (i, k, 0)),  # embeddings (bf16)
                pl.BlockSpec((H, H), lambda i, k: (0, 0)),          # pooler weight (resident)
                pl.BlockSpec((1, H), lambda i, k: (0, 0)),          # pooler bias (resident)
                pl.BlockSpec((H, C_pad), lambda i, k: (0, 0)),      # classifier W^T (padded)
                pl.BlockSpec((1, C_pad), lambda i, k: (0, 0)),      # classifier bias (padded)
            ],
            out_specs=pl.BlockSpec((TB, C_pad), lambda i, k: (i, 0)),
            scratch_shapes=[pltpu.VMEM((TB, H), jnp.float32)],      # per-batch-tile accumulator
        ),
        compiler_params=pltpu.CompilerParams(
            dimension_semantics=("parallel", "arbitrary"),
            vmem_limit_bytes=32 * 1024 * 1024,
        ),
    )(vl2d, emb, wp, bp, wc_t, bc)

    return logits_pad[:, :C]


# ---------------------------------------------------------------------------
# Params / reference
# ---------------------------------------------------------------------------
def init_params(key, vocab_size, num_segments, hidden_size, num_classes):
    k = jax.random.split(key, 4)
    scale = 0.02
    return {
        "word_emb": scale * jax.random.normal(k[0], (vocab_size, hidden_size), jnp.float32),
        "seg_emb":  scale * jax.random.normal(k[1], (num_segments, hidden_size), jnp.float32),
        "wp":       scale * jax.random.normal(k[2], (hidden_size, hidden_size), jnp.float32),
        "bp":       jnp.zeros((hidden_size,), jnp.float32),
        "wc":       scale * jax.random.normal(k[3], (num_classes, hidden_size), jnp.float32),
        "bc":       jnp.zeros((num_classes,), jnp.float32),
    }


def _reference_forward(token_ids, valid_length, segment_ids, params):
    B, S = token_ids.shape
    emb = (jnp.take(params["word_emb"], token_ids, axis=0)
           + jnp.take(params["seg_emb"], segment_ids, axis=0)).astype(jnp.float32)
    mask = (jnp.arange(S)[None, :] < valid_length[:, None]).astype(jnp.float32)
    summed = jnp.einsum('bs,bsh->bh', mask, emb)
    denom = jnp.clip(valid_length.astype(jnp.float32), 1.0, float(S))[:, None]
    mean = summed / denom
    pooled = jnp.tanh(mean @ params["wp"] + params["bp"][None, :])
    return pooled @ params["wc"].T + params["bc"][None, :]


if __name__ == "__main__":
    B, S, H, C = 16, 256, 128, 5
    VOCAB, NSEG = 128, 2

    key = jax.random.PRNGKey(0)
    kp, kt, ks, kv = jax.random.split(key, 4)

    params = init_params(kp, VOCAB, NSEG, H, C)

    token_ids = jax.random.randint(kt, (B, S), 0, VOCAB, dtype=jnp.int32)
    segment_ids = jax.random.randint(ks, (B, S), 0, NSEG, dtype=jnp.int32)
    valid_length = jax.random.randint(kv, (B,), 1, S + 1, dtype=jnp.int32)

    logits = bert_classifier_forward(token_ids, valid_length, segment_ids, params)
    logits = jax.block_until_ready(logits)

    assert logits.shape == (B, C) and logits.dtype == jnp.float32

    ref = _reference_forward(token_ids, valid_length, segment_ids, params)
    err = float(jnp.max(jnp.abs(logits - ref)))
    tol = 2e-2 * float(jnp.max(jnp.abs(ref))) + 1e-5   # bf16 streaming + approx recip
    assert err <= tol, (err, tol)

    print("KERNEL_OK")
</pallas_src>

<mosaic_0001>
module attributes {stable_mosaic.version = 11 : i64} {
  func.func @_fused_pooler_classifier_kernel(%arg0: i32, %arg1: i32, %arg2: memref<8x1xi32, #tpu.memory_space<vmem>>, %arg3: memref<8x128x128xbf16, #tpu.memory_space<vmem>>, %arg4: memref<128x128xf32, #tpu.memory_space<vmem>>, %arg5: memref<1x128xf32, #tpu.memory_space<vmem>>, %arg6: memref<128x128xf32, #tpu.memory_space<vmem>>, %arg7: memref<1x128xf32, #tpu.memory_space<vmem>>, %arg8: memref<8x128xf32, #tpu.memory_space<vmem>>, %arg9: memref<8x128xf32, #tpu.memory_space<vmem>>) attributes {dimension_semantics = [#tpu.dimension_semantics<parallel>, #tpu.dimension_semantics<arbitrary>], iteration_bounds = array<i64: 2, 2>, scalar_prefetch = 0 : i64, scratch_operands = 1 : i64, tpu.core_type = #tpu.core_type<tc>, window_params = [{transform_indices = @transform_0, window_bounds = array<i64: 8, 1>}, {transform_indices = @transform_1, window_bounds = array<i64: 8, 128, 128>}, {pipeline_mode = #tpu.pipeline_mode<synchronous>, transform_indices = @transform_2, window_bounds = array<i64: 128, 128>}, {pipeline_mode = #tpu.pipeline_mode<synchronous>, transform_indices = @transform_3, window_bounds = array<i64: 1, 128>}, {pipeline_mode = #tpu.pipeline_mode<synchronous>, transform_indices = @transform_4, window_bounds = array<i64: 128, 128>}, {pipeline_mode = #tpu.pipeline_mode<synchronous>, transform_indices = @transform_5, window_bounds = array<i64: 1, 128>}, {transform_indices = @transform_6, window_bounds = array<i64: 8, 128>}]} {
    %c0_i32 = arith.constant 0 : i32
    %0 = arith.cmpi eq, %arg1, %c0_i32 : i32
    %1 = arith.extui %0 : i1 to i32
    %c0_i32_0 = arith.constant 0 : i32
    %2 = arith.cmpi ne, %1, %c0_i32_0 : i32
    scf.if %2 {
      %cst_10 = arith.constant 0.000000e+00 : f32
      %23 = vector.broadcast %cst_10 : f32 to vector<8x128xf32>
      %c0_11 = arith.constant 0 : index
      %c0_12 = arith.constant 0 : index
      %24 = vector.load %arg9[%c0_11, %c0_12] : memref<8x128xf32, #tpu.memory_space<vmem>>, vector<8x128xf32>
      tpu.vector_store %arg9[%c0_11, %c0_12], %23 {strides = array<i32>} : memref<8x128xf32, #tpu.memory_space<vmem>>, vector<8x128xf32>,
    } else {
    }
    %c0 = arith.constant 0 : index
    %c0_1 = arith.constant 0 : index
    %c0_2 = arith.constant 0 : index
    %3 = vector.load %arg3[%c0, %c0_1, %c0_2] : memref<8x128x128xbf16, #tpu.memory_space<vmem>>, vector<8x128x128xbf16>
    %4 = tpu.iota {dimensions = array<i32: 2>} : vector<8x1x128xi32>
    %c128_i32 = arith.constant 128 : i32
    %5 = arith.muli %arg1, %c128_i32 : i32
    %6 = vector.broadcast %5 : i32 to vector<8x1x128xi32>
    %7 = arith.addi %4, %6 : vector<8x1x128xi32>
    %c0_3 = arith.constant 0 : index
    %c0_4 = arith.constant 0 : index
    %8 = vector.load %arg2[%c0_3, %c0_4] : memref<8x1xi32, #tpu.memory_space<vmem>>, vector<8x1xi32>
    %9 = vector.shape_cast %8 : vector<8x1xi32> to vector<8x1x1xi32>
    %10 = vector.broadcast %9 : vector<8x1x1xi32> to vector<8x1x128xi32>
    %11 = arith.cmpi slt, %7, %10 : vector<8x1x128xi32>
    %12 = arith.extui %11 : vector<8x1x128xi1> to vector<8x1x128xi32>
    %13 = arith.sitofp %12 : vector<8x1x128xi32> to vector<8x1x128xf32>
    %14 = arith.truncf %13 : vector<8x1x128xf32> to vector<8x1x128xbf16>
    "tpu.trace_start"() <{level = 10 : i32, message = "bqs,bsh->bqh"}> : () -> ()
    %cst = arith.constant dense<0.000000e+00> : vector<8x1x128xf32>
    %15 = tpu.matmul %14, %3, %cst {dimension_numbers = #tpu.dot_dimension_numbers<[2], [1], [1], [2], [0, 0, 0, 1, 1, 2], [0], [0]>} : vector<8x1x128xbf16>, vector<8x128x128xbf16>, vector<8x1x128xf32> -> vector<8x1x128xf32>
    "tpu.trace_stop"() : () -> ()
    %c0_5 = arith.constant 0 : index
    %c0_6 = arith.constant 0 : index
    %16 = vector.load %arg9[%c0_5, %c0_6] : memref<8x128xf32, #tpu.memory_space<vmem>>, vector<8x128xf32>
    %17 = vector.shape_cast %15 : vector<8x1x128xf32> to vector<8x128xf32>
    %18 = arith.addf %16, %17 : vector<8x128xf32>
    %c0_7 = arith.constant 0 : index
    %c0_8 = arith.constant 0 : index
    %19 = vector.load %arg9[%c0_7, %c0_8] : memref<8x128xf32, #tpu.memory_space<vmem>>, vector<8x128xf32>
    tpu.vector_store %arg9[%c0_7, %c0_8], %18 {strides = array<i32>} : memref<8x128xf32, #tpu.memory_space<vmem>>, vector<8x128xf32>,
    %c1_i32 = arith.constant 1 : i32
    %20 = arith.cmpi eq, %arg1, %c1_i32 : i32
    %21 = arith.extui %20 : i1 to i32
    %c0_i32_9 = arith.constant 0 : i32
    %22 = arith.cmpi ne, %21, %c0_i32_9 : i32
    scf.if %22 {
      %23 = arith.sitofp %8 : vector<8x1xi32> to vector<8x1xf32>
      %cst_10 = arith.constant 1.000000e+00 : f32
      %cst_11 = arith.constant 2.560000e+02 : f32
      %24 = vector.broadcast %cst_10 : f32 to vector<8x1xf32>
      %25 = arith.maximumf %24, %23 : vector<8x1xf32>
      %26 = vector.broadcast %cst_11 : f32 to vector<8x1xf32>
      %27 = arith.minimumf %26, %25 : vector<8x1xf32>
      %c0_12 = arith.constant 0 : index
      %c0_13 = arith.constant 0 : index
      %28 = vector.load %arg9[%c0_12, %c0_13] : memref<8x128xf32, #tpu.memory_space<vmem>>, vector<8x128xf32>
      %29 = tpu.reciprocal %27 {approx = true} : vector<8x1xf32> -> vector<8x1xf32>
      %30 = vector.broadcast %29 : vector<8x1xf32> to vector<8x128xf32>
      %31 = arith.mulf %28, %30 : vector<8x128xf32>
      %c0_14 = arith.constant 0 : index
      %c0_15 = arith.constant 0 : index
      %32 = vector.load %arg4[%c0_14, %c0_15] : memref<128x128xf32, #tpu.memory_space<vmem>>, vector<128x128xf32>
      %cst_16 = arith.constant dense<0.000000e+00> : vector<8x128xf32>
      %33 = tpu.matmul %31, %32, %cst_16 {dimension_numbers = #tpu.dot_dimension_numbers<[1], [0], [0], [1], [0, 0, 1, 1], [], []>} : vector<8x128xf32>, vector<128x128xf32>, vector<8x128xf32> -> vector<8x128xf32>
      %c0_17 = arith.constant 0 : index
      %c0_18 = arith.constant 0 : index
      %34 = vector.load %arg5[%c0_17, %c0_18] : memref<1x128xf32, #tpu.memory_space<vmem>>, vector<1x128xf32>
      %35 = vector.broadcast %34 : vector<1x128xf32> to vector<8x128xf32>
      %36 = arith.addf %33, %35 : vector<8x128xf32>
      %37 = math.tanh %36 : vector<8x128xf32>
      %c0_19 = arith.constant 0 : index
      %c0_20 = arith.constant 0 : index
      %38 = vector.load %arg6[%c0_19, %c0_20] : memref<128x128xf32, #tpu.memory_space<vmem>>, vector<128x128xf32>
      %cst_21 = arith.constant dense<0.000000e+00> : vector<8x128xf32>
      %39 = tpu.matmul %37, %38, %cst_21 {dimension_numbers = #tpu.dot_dimension_numbers<[1], [0], [0], [1], [0, 0, 1, 1], [], []>} : vector<8x128xf32>, vector<128x128xf32>, vector<8x128xf32> -> vector<8x128xf32>
      %c0_22 = arith.constant 0 : index
      %c0_23 = arith.constant 0 : index
      %40 = vector.load %arg7[%c0_22, %c0_23] : memref<1x128xf32, #tpu.memory_space<vmem>>, vector<1x128xf32>
      %41 = vector.broadcast %40 : vector<1x128xf32> to vector<8x128xf32>
      %42 = arith.addf %39, %41 : vector<8x128xf32>
      %c0_24 = arith.constant 0 : index
      %c0_25 = arith.constant 0 : index
      %43 = vector.load %arg8[%c0_24, %c0_25] : memref<8x128xf32, #tpu.memory_space<vmem>>, vector<8x128xf32>
      tpu.vector_store %arg8[%c0_24, %c0_25], %42 {strides = array<i32>} : memref<8x128xf32, #tpu.memory_space<vmem>>, vector<8x128xf32>,
    } else {
    }
    return
  }
  func.func @transform_0(%arg0: i32, %arg1: i32) -> (i32, i32) {
    %c0_i32 = arith.constant 0 : i32
    %c0_i32_0 = arith.constant 0 : i32
    return %arg0, %c0_i32 : i32, i32
  }
  func.func @transform_1(%arg0: i32, %arg1: i32) -> (i32, i32, i32) {
    %c0_i32 = arith.constant 0 : i32
    %c0_i32_0 = arith.constant 0 : i32
    return %arg0, %arg1, %c0_i32 : i32, i32, i32
  }
  func.func @transform_2(%arg0: i32, %arg1: i32) -> (i32, i32) {
    %c0_i32 = arith.constant 0 : i32
    %c0_i32_0 = arith.constant 0 : i32
    %c0_i32_1 = arith.constant 0 : i32
    return %c0_i32, %c0_i32_0 : i32, i32
  }
  func.func @transform_3(%arg0: i32, %arg1: i32) -> (i32, i32) {
    %c0_i32 = arith.constant 0 : i32
    %c0_i32_0 = arith.constant 0 : i32
    %c0_i32_1 = arith.constant 0 : i32
    return %c0_i32, %c0_i32_0 : i32, i32
  }
  func.func @transform_4(%arg0: i32, %arg1: i32) -> (i32, i32) {
    %c0_i32 = arith.constant 0 : i32
    %c0_i32_0 = arith.constant 0 : i32
    %c0_i32_1 = arith.constant 0 : i32
    return %c0_i32, %c0_i32_0 : i32, i32
  }
  func.func @transform_5(%arg0: i32, %arg1: i32) -> (i32, i32) {
    %c0_i32 = arith.constant 0 : i32
    %c0_i32_0 = arith.constant 0 : i32
    %c0_i32_1 = arith.constant 0 : i32
    return %c0_i32, %c0_i32_0 : i32, i32
  }
  func.func @transform_6(%arg0: i32, %arg1: i32) -> (i32, i32) {
    %c0_i32 = arith.constant 0 : i32
    %c0_i32_0 = arith.constant 0 : i32
    return %arg0, %c0_i32 : i32, i32
  }
}

</mosaic_0001>

<bundles_post_ra>
// kernel: tpu_custom_call.1
= control target key start
LH: loop header
LB: loop body
LE: loop exit
PB: predicated region body
PF: predicated region fallthrough
CT: control target
= control target key end

     0   :  { %s2388_s0 = inlined_call_operand.vmem [shape: s32[16,1], index: 0, kind: input, shape index: {}]   ;;  %s2389_s1 = inlined_call_operand.hbm [shape: bf16[16,256,128], index: 1, kind: input, shape index: {}]   ;;  %s2390_s2 = inlined_call_operand.hbm [shape: f32[128,128], index: 2, kind: input, shape index: {}]   ;;  %s2391_s3 = inlined_call_operand.vmem [shape: f32[1,128], index: 3, kind: input, shape index: {}]   ;;  %s2392_s4 = inlined_call_operand.hbm [shape: f32[128,128], index: 4, kind: input, shape index: {}]   ;;  %s2393_s5 = inlined_call_operand.vmem [shape: f32[1,128], index: 5, kind: input, shape index: {}]   ;;  %s2394_s6 = inlined_call_operand.hbm [shape: f32[16,128], index: 6, kind: output, shape index: {}]  }
   0x1   :  { %2402 = sst [smem:[#allocation24_spill]] %s2390_s2 }
   0x2   :  { %2403 = sst [smem:[#allocation25_spill]] %s2392_s4 }
   0x3   :  { %2404 = sst [smem:[#allocation26_spill]] %s2394_s6 }
   0x4   :  { %11 = vsyncpa [#allocation4], 0 }
   0x5   :  { %13 = vsyncpa [#allocation4 + $0x1], 0 }
   0x6   :  { %14 = vsyncpa [#allocation7], 0 }
   0x7   :  { %15 = vsyncpa [#allocation5], 0 }
   0x8   :  { %17 = vsyncpa [#allocation5 + $0x1], 0  ;;  %s2080_s21 = smov 0   ;;  %s2082_s22 = smov 0  }
   0x9   :  { %s2084_s23 = smov 0   ;;  %s2086_s24 = smov 0  }
   0xa   :  { %s2088_s25 = smov 0   ;;  %s2090_s26 = smov 0  }
   0xb   :  { %s2092_s27 = smov 0   ;;  %s2094_s28 = smov 0  }
   0xc   :  { %s2096_s29 = smov 0   ;;  %s2098_s30 = smov 0  }
   0xd   :  { %s2100_s7 = smov 0  }
   0xe LB: > { %2405 = sst [smem:[#allocation16_spill]] %s1997_s23  ;;  %s1325_s8 = sadd.s32 4294967295, %s2029_s7   ;;  %s2029_s7 = sphi %s2100_s7, %s23_s7   ;;  %s2025_s30 = sphi %s2098_s30, %s2430_s30   ;;  %s2021_s29 = sphi %s2096_s29, %s2429_s29   ;;  %s2017_s28 = sphi %s2094_s28, %s2428_s28   ;;  %s2013_s27 = sphi %s2092_s27, %s2427_s27   ;;  %s2009_s26 = sphi %s2090_s26, %s2435_s26   ;;  %s2005_s25 = sphi %s2088_s25, %s2434_s25   ;;  %s2001_s24 = sphi %s2086_s24, %s2433_s24   ;;  %s1997_s23 = sphi %s2084_s23, %s2425_s23   ;;  %s1993_s22 = sphi %s2082_s22, %s2432_s22   ;;  %s1989_s21 = sphi %s2080_s21, %s2431_s21  }
   0xf   : > { %2406 = sst [smem:[#allocation17_spill]] %s2021_s29  ;;  %s1326_s9 = sadd.s32 4294967294, %s2029_s7  }
  0x10   : > { %2407 = sst [smem:[#allocation18_spill]] %s2025_s30  ;;  %s32_s10 = sadd.s32 1, %s2021_s29 }
  0x11   : > { %s35_s11 = sadd.s32 1, %s2025_s30  ;;  %p33_p0 = scmp.ge.s32.totalorder %s32_s10, 2 }
  0x12   : > { %s70_s12 = sadd.s32 1, %s2009_s26  ;;  %p77_p1 = scmp.ne.s32.totalorder %s2009_s26, %s2005_s25 }
  0x13   : > { %p78_p2 = scmp.eq.s32.totalorder %s2029_s7, 0  ;;  %s2437_s10 = smov (%p33_p0, %s32_s10), 0 }
  0x14   : > { %2408 = sst [smem:[#allocation19_spill]] %s2437_s10  ;;  %s2439_s11 = smov (!%p33_p0, %s35_s11), %s2025_s30 }
  0x15   : > { %s66_s13 = ssub.s32 %s2021_s29, %s2437_s10  ;;  %p2146_p3 = por %p78_p2, %p77_p1 }
  0x16   : > { %p37_p4 = scmp.ge.s32.totalorder %s2439_s11, 2  ;;  %p83_p5 = scmp.ne.s32.totalorder %s2005_s25, %s2001_s24 }
  0x17   : > { %p2151_p6 = scmp.eq.s32.totalorder %s1325_s8, 0  ;;  %s180_s16 = sadd.s32 1, %s1997_s23 }
  0x18   : > { %s2441_s11 = smov (%p37_p4, %s2439_s11), 0  ;;  %p190_p8 = scmp.ne.s32.totalorder %s1997_s23, %s1993_s22 }
  0x19   : > { %2411 = sst [smem:[#allocation20_spill]] %s2441_s11  ;;  %p2160_p7 = por %p2151_p6, %p83_p5 }
  0x1a   : > { %s65_s18 = ssub.s32 %s2025_s30, %s2441_s11  ;;  %p191_p9 = scmp.eq.s32.totalorder %s1325_s8, 3 }
  0x1b   : > { %s67_s19 = sor.u32 %s66_s13, %s65_s18  ;;  %p178_p10 = scmp.eq.s32.totalorder %s65_s18, 0 }
  0x1c   : > { %p68_p11 = scmp.eq.s32.totalorder %s67_s19, 0  ;;  %p2168_p12 = por %p191_p9, %p190_p8 }
  0x1d   : > { %s2173_s24 = scalar_select %p178_p10, %s1997_s23, %s180_s16  }
  0x1e   : > { %s2176_s10 = scalar_select %p68_p11, %s2009_s26, %s70_s12  }
  0x1f   : > { %2414 = sst [smem:[#allocation21_spill]] %s2173_s24  ;;  %p196_p13 = scmp.ne.s32.totalorder %s1993_s22, %s1989_s21 }
  0x20   : > { %2415 = sst [smem:[#allocation22_spill]] %s2176_s10  ;;  %p197_p0 = scmp.eq.s32.totalorder %s1326_s9, 3 }
  0x21   : > { %p1327_p1 = scmp.ge.s32.totalorder %s2029_s7, 1  ;;  %p204_p2 = scmp.lt.s32.totalorder %s2029_s7, 5 }
  0x22   : > { %p2182_p4 = por %p197_p0, %p196_p13  ;;  %s2419_s2 = sld [smem:[#allocation24_spill]] }
  0x23   : > { %p2186_p5 = pnand %p1327_p1, %p204_p2  ;;  %s2031_s12 = smov [#allocation6]  }
  0x24   : > { %s2416_s6 = scalar_select %p2182_p4, 1, 0 }
  0x25   : > { %p1715_p8 = pneg %p2186_p5  ;;  %s217_s9 = sshll.u32 %s2031_s12, 4  ;;  %s218_s9 = int_to_ptr.vmem [resolvable:$true] %s217_s9 }
  0x26   : > { %2417 = sst [smem:[#allocation23_spill]] %s2416_s6  ;;  %s2032_s24 = smov 128  }
  0x27   : > { %p1716_p9 = pnand %p1715_p8, %p2151_p6  ;;  %s2420_s4 = sld [smem:[#allocation25_spill]] }
  0x28   : > { %s215_s16 = sshll.u32 %s2419_s2, 4  ;;  %s2033_s23 = smov 8   ;;  %s216_s16 = int_to_ptr.hbm [resolvable:$true] %s215_s16 }
  0x29   : > { %1718 = dma.hbm_to_vmem [thread:$0]  (!%p1716_p9), %s216_s16, 2048, %s218_s9, [#allocation7], %s2032_s24, %s2032_s24, %s2033_s23  }
  0x2a   : > { %s2034_s6 = smov [#allocation8]   ;;  %p1330_p10 = scmp.ge.s32.totalorder %s2029_s7, 4 }
  0x2b   : > { %s234_s13 = sshll.u32 %s2034_s6, 4  ;;  %s235_s13 = int_to_ptr.vmem [resolvable:$true] %s234_s13 }
  0x2c   : > { %247 = sbr.rel (%p1330_p10) target bundleno = 65 (0x41), region = 32 }
  0x2d   : > { %s232_s10 = sshll.u32 %s2420_s4, 4  ;;  %s233_s10 = int_to_ptr.hbm [resolvable:$true] %s232_s10 }
  0x2e   : > { %1721 = dma.hbm_to_vmem [thread:$0]  (!%p1716_p9), %s233_s10, 2048, %s235_s13, [#allocation7], %s2032_s24, %s2032_s24, %s2033_s23  }
  0x31   : > { %s258_s18 = sand.u32 1, %s2009_s26   ;;  %s1333_s11 = sshll.u32 %s2021_s29, 4 }
  0x32   : > { %s1331_s12 = sshll.u32 %s258_s18, 9  ;;  %s1631_s19 = sshll.u32 %s2025_s30, 8 }
  0x33   : > { %s268_s2 = sadd.s32 %s1631_s19, %s1333_s11  ;;  %s262_s6 = scalar_lea.vmem [#allocation3], %s1331_s12 }
  0x34   : > { %s1335_s16 = sshll.u32 %s268_s2, 2  ;;  %s285_s23 = sshll.u32 %s262_s6, 4  ;;  %s286_s23 = int_to_ptr.vmem [resolvable:$true] %s285_s23 }
  0x35   : > { %s270_s9 = scalar_lea.hbm %s2389_s1, %s1335_s16  ;;  %s2035_s4 = smov 2048  }
  0x36   : > { %s1700_s13 = scalar_select %p2146_p3, [#allocation0], [#allocation12] }
  0x37   : > { %1701 = sst [smem:[#allocation11]] (%p2146_p3), %s2035_s4  ;;  %s283_s30 = sshll.u32 %s270_s9, 4  ;;  %s284_s30 = int_to_ptr.hbm [resolvable:$true] %s283_s30 }
  0x38   : > { %s275_s29 = sld [smem:[%s1700_s13]]   ;;  %s2036_s11 = smov 1024  }
  0x39   : > { %1702 = sst [smem:[#allocation11 + $0x1]] (%p2146_p3), %s2036_s11  ;;  %s2037_s2 = smov 16  }
  0x3a   : > { %1703 = sst [smem:[#allocation11 + $0x2]] (%p2146_p3), %s2037_s2  ;;  %s2038_s12 = smov 64  }
  0x3b   : > { %1704 = sst [smem:[#allocation11 + $0x3]] (%p2146_p3), %s2038_s12  ;;  %s2039_s16 = smov 4  }
  0x3c   : > { %1705 = sst [smem:[#allocation11 + $0x4]] (%p2146_p3), %s2038_s12  ;;  %s259_s6 = scalar_lea.sflag [#allocation4], %s258_s18 }
  0x3d   : > { %1706 = sst [smem:[#allocation11 + $0x5]] (%p2146_p3), %s2039_s16  ;;  %s2040_s10 = smov [#allocation10]  }
  0x3e   : > { %s1336_s19 = sshll.u32 %s275_s29, 26 }
  0x3f   : > { %s1337_s4 = sadd.s32 134217728, %s1336_s19 }
  0x40   : > { %1707 = dma.general (%p2146_p3), %s284_s30, 8192, %s286_s23, %s259_s6, %s2040_s10, [#allocation11], %s1337_s4, 0  }
  0x41 PF: > { %310 = sbr.rel (%p2186_p5) target bundleno = 783 (0x30f), region = 44  ;;  %s312_s24 = sand.u32 (!%p2186_p5), 1, %s2005_s25  }
  0x42   : > { %s1339_s9 = sshll.u32 (!%p2186_p5), %s312_s24, 9  ;;  %s313_s13 = scalar_lea.sflag (!%p2186_p5), [#allocation4], %s312_s24 }
  0x43   : > { %s2226_s11 = scalar_lea.vmem (!%p2186_p5), [#allocation3], %s1339_s9 }
  0x46   : > { %1976 = dma.done.wait (%p2160_p7), %s313_s13, 8192  }
  0x47   : > { %1978 = vsyncadd (%p2160_p7), %s313_s13, 4294959104 }
  0x48   : > { %1980 = dma.done.wait (%p2151_p6), [#allocation7], 4096  }
  0x49   : > { %1982 = vsyncadd (%p2151_p6), [#allocation7], 4294963200  ;;  %s357_s29 = sand.u32 1, %s1993_s22   ;;  %p360_p3 = scmp.lt.s32.totalorder %s2017_s28, 1 }
  0x4a   : > { %s2240_s30 = sshll.u32 %s357_s29, 3  ;;  %p1344_p7 = scmp.ne.s32.totalorder %s2013_s27, 0 }
  0x4b   : > { %s361_s14 = scalar_select %p360_p3, %s2017_s28, 1 }
  0x4c   : > { %s359_s2 = scalar_lea.vmem [#allocation9], %s2240_s30  ;;  %369 = sbr.rel (%p1344_p7) target bundleno = 83 (0x53), region = 60 }
  0x4d   : > { %s1343_s8 = sshll.u32 %s361_s14, 3 }
  0x4e   : > { %s363_s23 = scalar_lea.vmem %s2388_s0, %s1343_s8 }
  0x51   : > { %v2041_v0 = vmov 0.0  }
  0x52   : > { %370 = vst [vmem:[#allocation2] sm:$0xff] %v2041_v0 }
  0x53 PF: > { %v2248_v1 = vld [vmem:[%s363_s23] sm:$0xff]  ;;  %v2042_v4 = vmov 0   ;;  %v1638_v8 = vld [vmem:[%s2226_s11 + $0x30] sm:$0xff]  ;;  %v1637_v15 = vld [vmem:[%s2226_s11 + $0x28] sm:$0xff]  ;;  %s1345_s15 = sshll.u32 %s2013_s27, 7  ;;  %p1626_p6 = scmp.ne.s32.totalorder %s2013_s27, 1 }
  0x54   : > { %v1639_v2 = vld [vmem:[%s2226_s11 + $0x38] sm:$0xff]  ;;  %1834 = vset.pattern.permute.xlu1 %v2042_v4  ;;  %1833 = vset.pattern.permute.xlu0 %v2042_v4  ;;  %v506_v5 = vrot.slane %v2248_v1, 2  ;;  %v510_v6 = vrot.slane %v2248_v1, 6  ;;  %v1654_v10 = vld [vmem:[%s2226_s11 + $0xb0] sm:$0xff]  ;;  %v505_v13 = vrot.slane %v2248_v1, 1  ;;  %v507_v14 = vrot.slane %v2248_v1, 3 }
  0x55   : > { %v1655_v3 = vld [vmem:[%s2226_s11 + $0xb8] sm:$0xff]  ;;  %513 = vperm.xlu1 %1834, %v2248_v1   ;;  %1835 = vset.pattern.permute.xlu2 %v2042_v4  ;;  %v1646_v11 = vld [vmem:[%s2226_s11 + $0x70] sm:$0xff]  ;;  %v511_v16 = vrot.slane %v2248_v1, 7  ;;  %v1653_v17 = vld [vmem:[%s2226_s11 + $0xa8] sm:$0xff]  ;;  %v509_v24 = vrot.slane %v2248_v1, 5  ;;  %v508_v25 = vrot.slane %v2248_v1, 4 }
  0x56   : > { %v1647_v7 = vld [vmem:[%s2226_s11 + $0x78] sm:$0xff]  ;;  %521 = vperm.xlu0 %1833, %v506_v5   ;;  %624 = vmatpush.bf16.msra.mxu0 %v1639_v2  ;;  %v1662_v12 = vld [vmem:[%s2226_s11 + $0xf0] sm:$0xff]  ;;  %v1645_v18 = vld [vmem:[%s2226_s11 + $0x68] sm:$0xff] }
  0x57   : > { %v1663_v9 = vld [vmem:[%s2226_s11 + $0xf8] sm:$0xff]  ;;  %537 = vperm.xlu2 %1835, %v510_v6   ;;  %746 = vmatpush.bf16.msra.mxu2 %v1655_v3  ;;  %v1661_v19 = vld [vmem:[%s2226_s11 + $0xe8] sm:$0xff]  ;;  %v1636_v20 = vld [vmem:[%s2226_s11 + $0x20] sm:$0xff] }
  0x58   : > { %685 = vmatpush.bf16.msra.mxu1 %v1647_v7  ;;  %807 = vmatpush.bf16.msra.mxu3 %v1663_v9  ;;  %v1652_v21 = vld [vmem:[%s2226_s11 + $0xa0] sm:$0xff]  ;;  %v1635_v26 = vld [vmem:[%s2226_s11 + $0x18] sm:$0xff]  ;;  %v1634_v30 = vld [vmem:[%s2226_s11 + $0x10] sm:$0xff] }
  0x59   : > { %v1644_v22 = vld [vmem:[%s2226_s11 + $0x60] sm:$0xff]  ;;  %v1651_v27 = vld [vmem:[%s2226_s11 + $0x98] sm:$0xff]  ;;  %v1650_v31 = vld [vmem:[%s2226_s11 + $0x90] sm:$0xff] }
  0x5a   : > { %625 = vmatpush.bf16.msra.mxu0 %v1638_v8  ;;  %v1660_v23 = vld [vmem:[%s2226_s11 + $0xe0] sm:$0xff]  ;;  %v1643_v28 = vld [vmem:[%s2226_s11 + $0x58] sm:$0xff]  ;;  %v1642_v32 = vld [vmem:[%s2226_s11 + $0x50] sm:$0xff] }
  0x5b   : > { %747 = vmatpush.bf16.msra.mxu2 %v1654_v10  ;;  %v1659_v29 = vld [vmem:[%s2226_s11 + $0xd8] sm:$0xff]  ;;  %v1658_v33 = vld [vmem:[%s2226_s11 + $0xd0] sm:$0xff]  ;;  %v1633_v34 = vld [vmem:[%s2226_s11 + $0x8] sm:$0xff]  ;;  %v499_v10 = vlaneseq }
  0x5c   : > { %686 = vmatpush.bf16.msra.mxu1 %v1646_v11  ;;  %808 = vmatpush.bf16.msra.mxu3 %v1662_v12  ;;  %v1649_v35 = vld [vmem:[%s2226_s11 + $0x88] sm:$0xff]  ;;  %v1632_v38 = vld [vmem:[%s2226_s11] sm:$0xff]  ;;  %v1671_v40 = vld [vmem:[%s2226_s11 + $0x138] sm:$0xff] }
  0x5d   : > { %517 = vperm.xlu1 %1834, %v505_v13   ;;  %v1641_v36 = vld [vmem:[%s2226_s11 + $0x48] sm:$0xff]  ;;  %v1648_v39 = vld [vmem:[%s2226_s11 + $0x80] sm:$0xff]  ;;  %v1687_v41 = vld [vmem:[%s2226_s11 + $0x1b8] sm:$0xff]  ;;  %v500_v12 = vand.u32 127, %v499_v10  ;;  %v502_v13 = vstv %s1345_s15 }
  0x5e   : > { %525 = vperm.xlu0 %1833, %v507_v14   ;;  %626 = vmatpush.bf16.msra.mxu0 %v1637_v15  ;;  %v1657_v37 = vld [vmem:[%s2226_s11 + $0xc8] sm:$0xff]  ;;  %v1640_v42 = vld [vmem:[%s2226_s11 + $0x40] sm:$0xff]  ;;  %v1679_v44 = vld [vmem:[%s2226_s11 + $0x178] sm:$0xff] }
  0x5f   : > { %541 = vperm.xlu2 %1835, %v511_v16   ;;  %748 = vmatpush.bf16.msra.mxu2 %v1653_v17  ;;  %v1656_v43 = vld [vmem:[%s2226_s11 + $0xc0] sm:$0xff]  ;;  %v1695_v45 = vld [vmem:[%s2226_s11 + $0x1f8] sm:$0xff]  ;;  %v1670_v46 = vld [vmem:[%s2226_s11 + $0x130] sm:$0xff]  ;;  %v503_v14 = vadd.s32 %v502_v13, %v500_v12 }
  0x60   : > { %687 = vmatpush.bf16.msra.mxu1 %v1645_v18  ;;  %809 = vmatpush.bf16.msra.mxu3 %v1661_v19  ;;  %v1686_v47 = vld [vmem:[%s2226_s11 + $0x1b0] sm:$0xff]  ;;  %v1669_v48 = vld [vmem:[%s2226_s11 + $0x128] sm:$0xff]  ;;  %v1668_v51 = vld [vmem:[%s2226_s11 + $0x120] sm:$0xff]  ;;  %v2043_v19 = vmov 1.0|1.0  }
  0x61   : > { %v1685_v49 = vld [vmem:[%s2226_s11 + $0x1a8] sm:$0xff]  ;;  %v1678_v50 = vld [vmem:[%s2226_s11 + $0x170] sm:$0xff]  ;;  %v1684_v52 = vld [vmem:[%s2226_s11 + $0x1a0] sm:$0xff] }
  0x62   : > { %627 = vmatpush.bf16.msra.mxu0 %v1636_v20  ;;  %v1694_v53 = vld [vmem:[%s2226_s11 + $0x1f0] sm:$0xff]  ;;  %v1677_v54 = vld [vmem:[%s2226_s11 + $0x168] sm:$0xff]  ;;  %v1667_v55 = vld [vmem:[%s2226_s11 + $0x118] sm:$0xff] }
  0x63   : > { %749 = vmatpush.bf16.msra.mxu2 %v1652_v21  ;;  %v1683_v56 = vld [vmem:[%s2226_s11 + $0x198] sm:$0xff]  ;;  %v1693_v57 = vld [vmem:[%s2226_s11 + $0x1e8] sm:$0xff]  ;;  %v1676_v58 = vld [vmem:[%s2226_s11 + $0x160] sm:$0xff] }
  0x64   : > { %688 = vmatpush.bf16.msra.mxu1 %v1644_v22  ;;  %810 = vmatpush.bf16.msra.mxu3 %v1660_v23  ;;  %v1666_v59 = vld [vmem:[%s2226_s11 + $0x110] sm:$0xff]  ;;  %v1692_v61 = vld [vmem:[%s2226_s11 + $0x1e0] sm:$0xff]  ;;  %v1675_v62 = vld [vmem:[%s2226_s11 + $0x158] sm:$0xff] }
  0x65   : > { %533 = vperm.xlu1 %1834, %v509_v24   ;;  %v1682_v60 = vld [vmem:[%s2226_s11 + $0x190] sm:$0xff]  ;;  %v1665_v63 = vld [vmem:[%s2226_s11 + $0x108] sm:$0xff]  ;;  %v1691_v2 = vld [vmem:[%s2226_s11 + $0x1d8] sm:$0xff] }
  0x66   : > { %529 = vperm.xlu0 %1833, %v508_v25   ;;  %628 = vmatpush.bf16.msra.mxu0 %v1635_v26  ;;  %v1681_v0 = vld [vmem:[%s2226_s11 + $0x188] sm:$0xff]  ;;  %v1674_v3 = vld [vmem:[%s2226_s11 + $0x150] sm:$0xff]  ;;  %v1664_v4 = vld [vmem:[%s2226_s11 + $0x100] sm:$0xff] }
  0x67   : > { %750 = vmatpush.bf16.msra.mxu2 %v1651_v27  ;;  %v1680_v5 = vld [vmem:[%s2226_s11 + $0x180] sm:$0xff]  ;;  %v1690_v6 = vld [vmem:[%s2226_s11 + $0x1d0] sm:$0xff]  ;;  %v1673_v7 = vld [vmem:[%s2226_s11 + $0x148] sm:$0xff] }
  0x68   : > { %689 = vmatpush.bf16.msra.mxu1 %v1643_v28  ;;  %811 = vmatpush.bf16.msra.mxu3 %v1659_v29  ;;  %v1689_v8 = vld [vmem:[%s2226_s11 + $0x1c8] sm:$0xff]  ;;  %v1672_v9 = vld [vmem:[%s2226_s11 + $0x140] sm:$0xff] }
  0x69   : > { %v1688_v11 = vld [vmem:[%s2226_s11 + $0x1c0] sm:$0xff] }
  0x6a   : > { %629 = vmatpush.bf16.msra.mxu0 %v1634_v30 }
  0x6b   : > { %751 = vmatpush.bf16.msra.mxu2 %v1650_v31 }
  0x6c   : > { %690 = vmatpush.bf16.msra.mxu1 %v1642_v32  ;;  %812 = vmatpush.bf16.msra.mxu3 %v1658_v33 }
  0x6e   : > { %630 = vmatpush.bf16.msra.mxu0 %v1633_v34 }
  0x6f   : > { %752 = vmatpush.bf16.msra.mxu2 %v1649_v35 }
  0x70   : > { %691 = vmatpush.bf16.msra.mxu1 %v1641_v36  ;;  %813 = vmatpush.bf16.msra.mxu3 %v1657_v37 }
  0x72   : > { %631 = vmatpush.bf16.msra.mxu0 %v1632_v38 }
  0x73   : > { %753 = vmatpush.bf16.msra.mxu2 %v1648_v39 }
  0x74   : > { %692 = vmatpush.bf16.msra.mxu1 %v1640_v42  ;;  %814 = vmatpush.bf16.msra.mxu3 %v1656_v43 }
  0x76   : > { %868 = vmatpush.bf16.msrb.mxu0 %v1671_v40 }
  0x77   : > { %990 = vmatpush.bf16.msrb.mxu2 %v1687_v41 }
  0x78   : > { %929 = vmatpush.bf16.msrb.mxu1 %v1679_v44  ;;  %1051 = vmatpush.bf16.msrb.mxu3 %v1695_v45 }
  0x7a   : > { %869 = vmatpush.bf16.msrb.mxu0 %v1670_v46 }
  0x7b   : > { %991 = vmatpush.bf16.msrb.mxu2 %v1686_v47 }
  0x7c   : > { %930 = vmatpush.bf16.msrb.mxu1 %v1678_v50  ;;  %1052 = vmatpush.bf16.msrb.mxu3 %v1694_v53 }
  0x7e   : > { %870 = vmatpush.bf16.msrb.mxu0 %v1669_v48 }
  0x7f   : > { %992 = vmatpush.bf16.msrb.mxu2 %v1685_v49 }
  0x80   : > { %931 = vmatpush.bf16.msrb.mxu1 %v1677_v54  ;;  %1053 = vmatpush.bf16.msrb.mxu3 %v1693_v57  ;;  %v1064_v57 = vld [vmem:[#allocation2] sm:$0xff] }
  0x82   : > { %871 = vmatpush.bf16.msrb.mxu0 %v1668_v51 }
  0x83   : > { %993 = vmatpush.bf16.msrb.mxu2 %v1684_v52 }
  0x84   : > { %932 = vmatpush.bf16.msrb.mxu1 %v1676_v58  ;;  %1054 = vmatpush.bf16.msrb.mxu3 %v1692_v61 }
  0x86   : > { %872 = vmatpush.bf16.msrb.mxu0 %v1667_v55 }
  0x87   : > { %994 = vmatpush.bf16.msrb.mxu2 %v1683_v56 }
  0x88   : > { %933 = vmatpush.bf16.msrb.mxu1 %v1675_v62  ;;  %1055 = vmatpush.bf16.msrb.mxu3 %v1691_v2 }
  0x8a   : > { %873 = vmatpush.bf16.msrb.mxu0 %v1666_v59 }
  0x8b   : > { %995 = vmatpush.bf16.msrb.mxu2 %v1682_v60 }
  0x8c   : > { %934 = vmatpush.bf16.msrb.mxu1 %v1674_v3  ;;  %1056 = vmatpush.bf16.msrb.mxu3 %v1690_v6 }
  0x8e   : > { %874 = vmatpush.bf16.msrb.mxu0 %v1665_v63 }
  0x8f   : > { %996 = vmatpush.bf16.msrb.mxu2 %v1681_v0 }
  0x90   : > { %935 = vmatpush.bf16.msrb.mxu1 %v1673_v7  ;;  %1057 = vmatpush.bf16.msrb.mxu3 %v1689_v8 }
  0x92   : > { %875 = vmatpush.bf16.msrb.mxu0 %v1664_v4 }
  0x93   : > { %997 = vmatpush.bf16.msrb.mxu2 %v1680_v5 }
  0x94   : > { %936 = vmatpush.bf16.msrb.mxu1 %v1672_v9  ;;  %1058 = vmatpush.bf16.msrb.mxu3 %v1688_v11 }
  0xb1   : > { %v538_v22 = vpop.permute.xlu2 %537 }
  0xb2   : > { %v539_v25 = vperm.slane %v538_v22, 0 }
  0xb4   : > { %vm550_vm8 = vcmp.lt.s32.totalorder %v503_v14, %v539_v25 }
  0xb5   : > { %vm1590_vm9 = vmpackc.low %vm550_vm8, %vm550_vm8 }
  0xb9   : > { %v542_v29 = vpop.permute.xlu2 %541 }
  0xba   : > { %v543_v31 = vperm.slane %v542_v29, 0 }
  0xbc   : > { %vm551_vm13 = vcmp.lt.s32.totalorder %v503_v14, %v543_v31 }
  0xbd   : > { %vm1624_vm15 = vmpackc.low %vm551_vm13, %vm551_vm13 }
  0xc7   : > { %v514_v15 = vpop.permute.xlu1 %513 }
  0xc8   : > { %v515_v16 = vperm.slane %v514_v15, 0  ;;  %v522_v17 = vpop.permute.xlu0 %521 }
  0xc9   : > { %v523_v18 = vperm.slane %v522_v17, 0 }
  0xca   : > { %vm544_vm0 = vcmp.lt.s32.totalorder %v503_v14, %v515_v16 }
  0xcb   : > { %vm1386_vm1 = vmpackc.low %vm544_vm0, %vm544_vm0  ;;  %vm546_vm2 = vcmp.lt.s32.totalorder %v503_v14, %v523_v18  ;;  %vm1074_vm0 = vcmask 1041409  }
  0xcc   : > { %1387 = vmatmul.msk.bf16.vlgmr.msra.gmra.mxu0 %vm1386_vm1, %v2043_v19  ;;  %vm1454_vm3 = vmpackc.low %vm546_vm2, %vm546_vm2  ;;  %vm1077_vm1 = vcmask 1042434   ;;  %vm1080_vm2 = vcmask 1043459  }
  0xcd   : > { %1455 = vmatmul.msk.bf16.vlgmr.msra.gmra.mxu2 %vm1454_vm3, %v2043_v19  ;;  %vm1083_vm3 = vcmask 1044484  }
  0xcf   : > { %v518_v20 = vpop.permute.xlu1 %517 }
  0xd0   : > { %v519_v21 = vperm.slane %v518_v20, 0  ;;  %v526_v23 = vpop.permute.xlu0 %525 }
  0xd1   : > { %v527_v24 = vperm.slane %v526_v23, 0 }
  0xd2   : > { %vm545_vm4 = vcmp.lt.s32.totalorder %v503_v14, %v519_v21 }
  0xd3   : > { %vm1420_vm5 = vmpackc.low %vm545_vm4, %vm545_vm4  ;;  %vm547_vm6 = vcmp.lt.s32.totalorder %v503_v14, %v527_v24  ;;  %vm1086_vm4 = vcmask 1045509  }
  0xd4   : > { %1421 = vmatmul.msk.bf16.vlgmr.msra.gmra.mxu1 %vm1420_vm5, %v2043_v19  ;;  %vm1488_vm7 = vmpackc.low %vm547_vm6, %vm547_vm6  ;;  %vm1089_vm5 = vcmask 1046534   ;;  %vm1092_vm6 = vcmask 1047559  }
  0xd5   : > { %1489 = vmatmul.msk.bf16.vlgmr.msra.gmra.mxu3 %vm1488_vm7, %v2043_v19 }
  0xd7   : > { %v534_v27 = vpop.permute.xlu1 %533 }
  0xd8   : > { %v530_v26 = vpop.permute.xlu0 %529  ;;  %v535_v30 = vperm.slane %v534_v27, 0 }
  0xd9   : > { %v531_v28 = vperm.slane %v530_v26, 0 }
  0xda   : > { %vm549_vm12 = vcmp.lt.s32.totalorder %v503_v14, %v535_v30 }
  0xdb   : > { %vm548_vm10 = vcmp.lt.s32.totalorder %v503_v14, %v531_v28  ;;  %vm1556_vm14 = vmpackc.low %vm549_vm12, %vm549_vm12 }
  0xdc   : > { %vm1522_vm11 = vmpackc.low %vm548_vm10, %vm548_vm10 }
  0xdd   : > { %1523 = vmatmul.msk.bf16.vlgmr.msrb.gmra.mxu0 %vm1522_vm11, %v2043_v19  ;;  %1591 = vmatmul.msk.bf16.vlgmr.msrb.gmra.mxu2 %vm1590_vm9, %v2043_v19 }
  0xe4   : > { %1557 = vmatmul.msk.bf16.vlgmr.msrb.gmra.mxu1 %vm1556_vm14, %v2043_v19 }
  0xe5   : > { %1625 = vmatmul.msk.bf16.vlgmr.msrb.gmra.mxu3 %vm1624_vm15, %v2043_v19 }
 0x149   : > { %v633_v32 = vpop.f32.mrf.mxu0 }
 0x150   : > { %v755_v33 = vpop.f32.mrf.mxu2 }
 0x151   : > { %v635_v34 = vpop.f32.mrf.mxu0  ;;  %v694_v35 = vpop.f32.mrf.mxu1  ;;  %v1076_v43 = vrot.slane %v755_v33, 6 }
 0x152   : > { %v1073_v40 = vrot.slane %v694_v35, 7 }
 0x154   : > { %v1075_v41 = vsel %vm1074_vm0, %v1073_v40, %v633_v32 }
 0x155   : > { %v1078_v47 = vsel %vm1077_vm1, %v1076_v43, %v1075_v41 }
 0x158   : > { %v757_v36 = vpop.f32.mrf.mxu2  ;;  %v816_v37 = vpop.f32.mrf.mxu3 }
 0x159   : > { %v696_v38 = vpop.f32.mrf.mxu1  ;;  %v1079_v42 = vrot.slane %v816_v37, 5 }
 0x15a   : > { %v877_v39 = vpop.f32.mrf.mxu0 }
 0x15b   : > { %v1082_v48 = vrot.slane %v877_v39, 4  ;;  %v1081_v50 = vsel %vm1080_vm2, %v1079_v42, %v1078_v47 }
 0x15d   : > { %v1084_v52 = vsel %vm1083_vm3, %v1082_v48, %v1081_v50 }
 0x160   : > { %v818_v44 = vpop.f32.mrf.mxu3  ;;  %v999_v45 = vpop.f32.mrf.mxu2 }
 0x161   : > { %v938_v46 = vpop.f32.mrf.mxu1  ;;  %v1088_v54 = vrot.slane %v999_v45, 2 }
 0x162   : > { %v879_v49 = vpop.f32.mrf.mxu0  ;;  %v1085_v51 = vrot.slane %v938_v46, 3 }
 0x164   : > { %v1087_v53 = vsel %vm1086_vm4, %v1085_v51, %v1084_v52 }
 0x165   : > { %v1090_v60 = vsel %vm1089_vm5, %v1088_v54, %v1087_v53 }
 0x168   : > { %v1001_v55 = vpop.f32.mrf.mxu2  ;;  %v1060_v56 = vpop.f32.mrf.mxu3 }
 0x169   : > { %v1091_v58 = vrot.slane %v1060_v56, 1  ;;  %v940_v59 = vpop.f32.mrf.mxu1 }
 0x16b   : > { %v1093_v61 = vsel %vm1092_vm6, %v1091_v58, %v1090_v60 }
 0x16c   : > { %v1095_v62 = vadd.f32 %v1093_v61, %v1064_v57  ;;  %1100 = sbr.rel (%p1626_p6) target bundleno = 763 (0x2fb), region = 64 }
 0x16e   : > { %1096 = vst [vmem:[#allocation2] sm:$0xff] %v1095_v62 }
 0x170   : > { %v1062_v63 = vpop.f32.mrf.mxu3 }
 0x171   : > { %v1101_v0 = vcvt.s32.f32 %v2248_v1  ;;  %v1127_v2 = vld [vmem:[#allocation6 + $0x78] sm:$0xff]  ;;  %v1126_v3 = vld [vmem:[#allocation6 + $0x70] sm:$0xff]  ;;  %v2044_v4 = vmov 0   ;;  %v1125_v6 = vld [vmem:[#allocation6 + $0x68] sm:$0xff] }
 0x172   : > { %1836 = vset.pattern.permute.xlu0 %v2044_v4  ;;  %1132 = vmatpush.msra.mxu0 %v1127_v2  ;;  %v1124_v8 = vld [vmem:[#allocation6 + $0x60] sm:$0xff]  ;;  %v1123_v9 = vld [vmem:[#allocation6 + $0x58] sm:$0xff]  ;;  %v1122_v10 = vld [vmem:[#allocation6 + $0x50] sm:$0xff] }
 0x173   : > { %v1102_v5 = vmax.f32 %v1101_v0, 1.0  ;;  %v1121_v11 = vld [vmem:[#allocation6 + $0x48] sm:$0xff]  ;;  %v1120_v1 = vld [vmem:[#allocation6 + $0x40] sm:$0xff]  ;;  %v1119_v13 = vld [vmem:[#allocation6 + $0x38] sm:$0xff] }
 0x174   : > { %1133 = vmatpush.msra.mxu0 %v1126_v3  ;;  %v1118_v14 = vld [vmem:[#allocation6 + $0x30] sm:$0xff]  ;;  %v1117_v15 = vld [vmem:[#allocation6 + $0x28] sm:$0xff]  ;;  %v1116_v16 = vld [vmem:[#allocation6 + $0x20] sm:$0xff] }
 0x175   : > { %v1103_v7 = vmin.f32 %v1102_v5, 256.0  ;;  %v1115_v17 = vld [vmem:[#allocation6 + $0x18] sm:$0xff]  ;;  %v1114_v18 = vld [vmem:[#allocation6 + $0x10] sm:$0xff]  ;;  %v1113_v19 = vld [vmem:[#allocation6 + $0x8] sm:$0xff] }
 0x176   : > { %1134 = vmatpush.msra.mxu0 %v1125_v6  ;;  %v1112_v20 = vld [vmem:[#allocation6] sm:$0xff]  ;;  %v1168_v21 = vld [vmem:[#allocation8 + $0x78] sm:$0xff]  ;;  %v1167_v22 = vld [vmem:[#allocation8 + $0x70] sm:$0xff] }
 0x177   : > { %1839 = vrcp.f32 %v1103_v7  ;;  %1173 = vmatpush.msra.mxu1 %v1168_v21  ;;  %v1166_v23 = vld [vmem:[#allocation8 + $0x68] sm:$0xff]  ;;  %v1165_v24 = vld [vmem:[#allocation8 + $0x60] sm:$0xff]  ;;  %v1164_v25 = vld [vmem:[#allocation8 + $0x58] sm:$0xff] }
 0x178   : > { %1135 = vmatpush.msra.mxu0 %v1124_v8  ;;  %v1163_v26 = vld [vmem:[#allocation8 + $0x50] sm:$0xff]  ;;  %v1162_v27 = vld [vmem:[#allocation8 + $0x48] sm:$0xff]  ;;  %v1161_v28 = vld [vmem:[#allocation8 + $0x40] sm:$0xff] }
 0x179   : > { %1174 = vmatpush.msra.mxu1 %v1167_v22  ;;  %v1160_v29 = vld [vmem:[#allocation8 + $0x38] sm:$0xff]  ;;  %v1159_v30 = vld [vmem:[#allocation8 + $0x30] sm:$0xff]  ;;  %v1158_v31 = vld [vmem:[#allocation8 + $0x28] sm:$0xff] }
 0x17a   : > { %1136 = vmatpush.msra.mxu0 %v1123_v9  ;;  %v1104_v32 = vld [vmem:[#allocation2] sm:$0xff]  ;;  %v1157_v35 = vld [vmem:[#allocation8 + $0x20] sm:$0xff]  ;;  %v1155_v37 = vld [vmem:[#allocation8 + $0x10] sm:$0xff] }
 0x17b   : > { %1175 = vmatpush.msra.mxu1 %v1166_v23  ;;  %v1156_v36 = vld [vmem:[#allocation8 + $0x18] sm:$0xff]  ;;  %v1154_v38 = vld [vmem:[#allocation8 + $0x8] sm:$0xff]  ;;  %v1153_v39 = vld [vmem:[#allocation8] sm:$0xff] }
 0x17c   : > { %1137 = vmatpush.msra.mxu0 %v1122_v10  ;;  %v1837_v40 = vld [vmem:[%s2391_s3] ss:$0 sm:$0xff] }
 0x17d   : > { %v1840_v12 = vpop.eup %1839  ;;  %1176 = vmatpush.msra.mxu1 %v1165_v24  ;;  %v1838_v44 = vld [vmem:[%s2393_s5] ss:$0 sm:$0xff] }
 0x17e   : > { %1108 = vperm.xlu0 %1836, %v1840_v12   ;;  %1138 = vmatpush.msra.mxu0 %v1121_v11 }
 0x17f   : > { %1177 = vmatpush.msra.mxu1 %v1164_v25 }
 0x180   : > { %1139 = vmatpush.msra.mxu0 %v1120_v1 }
 0x181   : > { %1178 = vmatpush.msra.mxu1 %v1163_v26 }
 0x182   : > { %1140 = vmatpush.msra.mxu0 %v1119_v13 }
 0x183   : > { %1179 = vmatpush.msra.mxu1 %v1162_v27 }
 0x184   : > { %1141 = vmatpush.msra.mxu0 %v1118_v14 }
 0x185   : > { %1180 = vmatpush.msra.mxu1 %v1161_v28 }
 0x186   : > { %1142 = vmatpush.msra.mxu0 %v1117_v15 }
 0x187   : > { %1181 = vmatpush.msra.mxu1 %v1160_v29 }
 0x188   : > { %1143 = vmatpush.msra.mxu0 %v1116_v16 }
 0x189   : > { %1182 = vmatpush.msra.mxu1 %v1159_v30 }
 0x18a   : > { %1144 = vmatpush.msra.mxu0 %v1115_v17 }
 0x18b   : > { %1183 = vmatpush.msra.mxu1 %v1158_v31 }
 0x18c   : > { %1145 = vmatpush.msra.mxu0 %v1114_v18 }
 0x18d   : > { %1184 = vmatpush.msra.mxu1 %v1157_v35 }
 0x18e   : > { %1146 = vmatpush.msra.mxu0 %v1113_v19 }
 0x18f   : > { %1185 = vmatpush.msra.mxu1 %v1156_v36 }
 0x190   : > { %1147 = vmatpush.msra.mxu0 %v1112_v20 }
 0x191   : > { %1186 = vmatpush.msra.mxu1 %v1155_v37 }
 0x193   : > { %1187 = vmatpush.msra.mxu1 %v1154_v38 }
 0x195   : > { %1188 = vmatpush.msra.mxu1 %v1153_v39 }
 0x1f0   : > { %v1109_v33 = vpop.permute.xlu0 %1108 }
 0x1f1   : > { %v1111_v34 = vmul.f32 %v1109_v33, %v1104_v32 }
 0x1f3   : > { %1148 = vmatmul.f32.vlgmr.msra.gmra.mxu0 %v1111_v34 }
 0x270   : > { %v1149_v41 = vpop.f32.mrf.mxu0 }
 0x271   : > { %v1150_v42 = vadd.f32 %v1837_v40, %v1149_v41 }
 0x273   : > { %1841 = vtanh.f32 %v1150_v42 }
 0x279   : > { %v1842_v43 = vpop.eup %1841 }
 0x27a   : > { %1189 = vmatmul.f32.vlgmr.msra.gmra.mxu1 %v1842_v43 }
 0x2f7   : > { %v1190_v45 = vpop.f32.mrf.mxu1 }
 0x2f8   : > { %v1191_v46 = vadd.f32 %v1838_v44, %v1190_v45 }
 0x2fa   : > { %1193 = vst [vmem:[%s359_s2] sm:$0xff] %v1191_v46 }
 0x2fb PF: > { %s1628_s4 = sshll.u32 %s2017_s28, 3  ;;  %s2421_s24 = sld [smem:[#allocation26_spill]] }
 0x2fc   : > { %s1207_s11 = sshll.u32 %s359_s2, 4  ;;  %s1195_s8 = scalar_lea.sflag [#allocation5], %s357_s29  ;;  %s1208_s11 = int_to_ptr.vmem [resolvable:$true] %s1207_s11 }
 0x301   : > { %s2422_s9 = smov %s2421_s24  ;;  %s1205_s13 = scalar_lea.hbm %s2421_s24, %s1628_s4 }
 0x302   : > { %s1209_s14 = sshll.u32 %s1205_s13, 4  ;;  %s1923_s15 = scalar_lea.hbm %s2422_s9, 16  ;;  %s1210_s14 = int_to_ptr.hbm [resolvable:$true] %s1209_s14 }
 0x303   : > { %s1917_s17 = sshra.s32 %s1210_s14, 4  ;;  %s1918_s17 = int_to_ptr.hbm [resolvable:$true] %s1917_s17 }
 0x304   : > { %s1919_s18 = scalar_lea.hbm %s1918_s17, 8  ;;  %p1924_p1 = scmp.lt.s32.totalorder %s1918_s17, %s2422_s9 }
 0x305   : > { %p1920_p11 = scmp.ne.s32.totalorder %s1918_s17, %s1919_s18  ;;  %p1925_p2 = scmp.lt.s32.totalorder %s1923_s15, %s1919_s18 }
 0x307   : > { %p1921_p13 = pnand %p1920_p11, %p2168_p12  ;;  %p1926_p5 = por %p1925_p2, %p1924_p1 }
 0x309   : > { %p1922_p0 = pneg %p1921_p13 }
 0x30b   : > { %p1927_p8 = pnand %p1926_p5, %p1922_p0 }
 0x30d   : > { %1930 = shalt.err (!%p1927_p8)
}
 0x30e   : > { %1713 = dma.vmem_to_hbm [thread:$0]  (%p2168_p12), %s1208_s11, 128, %s1210_s14, %s1195_s8  }
 0x30f PF: > { %p1730_p9 = scmp.ge.s32.totalorder %s2029_s7, 2  ;;  %s1221_s30 = sand.u32 1, %s1989_s21  }
 0x310   : > { %s1222_s2 = scalar_lea.sflag [#allocation5], %s1221_s30 }
 0x311   : > { %p1723_p10 = pnand %p1730_p9, %p2182_p4 }
 0x313   : > { %p1724_p3 = pneg %p1723_p10 }
 0x315   : > { %1984 = dma.done.wait (%p1724_p3), %s1222_s2, 128  }
 0x316   : > { %1986 = vsyncadd (%p1724_p3), %s1222_s2, 4294967168  ;;  %s23_s7 = sadd.s32 1, %s2029_s7   ;;  %s2424_s19 = sld [smem:[#allocation16_spill]] }
 0x317   : > { %p20_p7 = scmp.ge.s32.totalorder %s23_s7, 6   ;;  %s2425_s23 = sld [smem:[#allocation21_spill]] }
 0x318   : > { %s2426_s20 = sld [smem:[#allocation22_spill]]  ;;  %s2431_s21 = smov %s1993_s22 }
 0x319   : > { %s2427_s27 = sld [smem:[#allocation17_spill]]  ;;  %s2433_s24 = smov %s2005_s25 }
 0x31a   : > { %s2428_s28 = sld [smem:[#allocation18_spill]]  ;;  %s2434_s25 = smov %s2009_s26 }
 0x31b   : > { %s2429_s29 = sld [smem:[#allocation19_spill]]  ;;  %22 = sbr.rel (!%p20_p7) target bundleno = 14 (0xe), region = 113 }
 0x31c   : > { %s2430_s30 = sld [smem:[#allocation20_spill]]  ;;  %s2432_s22 = smov %s2424_s19 }
 0x31e   : > { %s2435_s26 = smov %s2426_s20 }
 0x320   :  { %1228 = vsyncpa [#allocation4], 1 }
 0x321   :  { %1230 = vsyncpa [#allocation4 + $0x1], 1 }
 0x322   :  { %1231 = vsyncpa [#allocation7], 1 }
 0x323   :  { %1232 = vsyncpa [#allocation5], 1 }
 0x324   :  { %1234 = vsyncpa [#allocation5 + $0x1], 1 }

</bundles_post_ra>
